<compile_context>
chip_gen: v6e
topology: v6e:2x2x1
jax: 0.10.0
libtpu: 0.0.40
codegen_flags: <defaults>
</compile_context>

<pallas_src>
import math
import functools

import jax
import jax.numpy as jnp
from jax import lax
from jax.experimental import pallas as pl
from jax.experimental.pallas import tpu as pltpu


# ----------------------------- fused QKV-projection + attention kernel -----------------------------
def _fused_mha_kernel(x_ref, w_ref, b_ref, o_ref, *, nheads, scale):
    # x_ref: (Bt, S, D)        bf16   -- one batch tile per grid step
    # w_ref: (D, 3D)           bf16   -- resident across the grid (constant index_map)
    # b_ref: (1, 3D)           f32    -- resident across the grid
    # o_ref: (Bt, H, S, Dh)    bf16
    bt, seq, d_model = x_ref.shape
    dh = d_model // nheads
    m_rows = bt * seq

    # Fold the batch tile into the matmul M-dim: (Bt, S, D) -> (Bt*S, D) is a layout-free
    # leading-dim collapse, so the projection fills the MXU's systolic rows.
    x2d = x_ref[...].reshape(m_rows, d_model)                        # (M, D) bf16
    w = w_ref[...]                                                   # (D, 3D) bf16

    # QKV projection on the MXU (bf16 operands, f32 accumulation); bias add in f32.
    qkv = jnp.dot(x2d, w, preferred_element_type=jnp.float32) + b_ref[...]   # (M, 3D) f32

    # One wide cast instead of 3*H small per-head casts (VPU / vreg-pressure savings).
    qkv_bf = qkv.astype(jnp.bfloat16)                                # (M, 3D) bf16

    # Process heads in 128-lane-aligned groups when Dh itself is not lane-aligned
    # (e.g. Dh=64 -> pairs at column offsets that are multiples of 128).
    group = 2 if (nheads % 2 == 0 and (2 * dh) % 128 == 0 and dh % 128 != 0) else 1

    outs = []
    for pair in range(nheads // group):
        base = pair * group * dh
        width = group * dh
        qg = qkv_bf[:, base:base + width]                            # (M, group*Dh) lane-aligned
        kg = qkv_bf[:, d_model + base:d_model + base + width]
        vg = qkv_bf[:, 2 * d_model + base:2 * d_model + base + width]
        for j in range(group):
            # Split back to per-batch-row views (leading-dim split, layout-free) so attention
            # never mixes different batch elements despite the folded projection.
            q = qg[:, j * dh:(j + 1) * dh].reshape(bt, seq, dh)      # (Bt, S, Dh) bf16
            k = kg[:, j * dh:(j + 1) * dh].reshape(bt, seq, dh)
            v = vg[:, j * dh:(j + 1) * dh].reshape(bt, seq, dh)

            # Scores: batched NT-form contraction over Dh (never materialize k.T).
            s = jnp.einsum("bqd,bkd->bqk", q, k,
                           preferred_element_type=jnp.float32)       # (Bt, S, S) f32

            # Numerically stable softmax with the 1/sqrt(Dh) scale folded into the exp argument:
            # exp((s - max(s)) * scale) == softmax(s * scale) numerator since scale > 0.
            m = jnp.max(s, axis=-1, keepdims=True)
            p = jnp.exp((s - m) * scale)
            l = jnp.sum(p, axis=-1, keepdims=True)

            # Attention output; normalization deferred until after the (S, Dh) matmul so the
            # divide runs once on the output tile via the EUP approx reciprocal (l >= 1, safe).
            o = jnp.einsum("bqk,bkd->bqd", p.astype(jnp.bfloat16), v,
                           preferred_element_type=jnp.float32)       # (Bt, S, Dh) f32
            outs.append(o * pl.reciprocal(l, approx=True))

    # One store per grid step (instead of H separate 64-lane stores), in bf16.
    stacked = jnp.stack(outs, axis=1)                                # (Bt, H, S, Dh) f32
    o_ref[...] = stacked.astype(o_ref.dtype)


def _choose_batch_tile(batch: int, seq: int, target_rows: int = 256, min_rows: int = 128) -> int:
    """Pick how many batch rows to fold per grid step.

    Targets Bt*S >= 256 (full v6e/v7x MXU M-dim; 2x v5e's 128) while keeping >= 2 parallel grid
    steps when the batch allows it so both v7x TensorCores get work.  Bt always divides B.
    """
    divisors = [d for d in range(1, batch + 1) if batch % d == 0]
    bt = batch
    for d in divisors:                       # smallest divisor reaching the MXU row target
        if d * seq >= target_rows:
            bt = d
            break
    if batch // bt < 2:                      # try to keep >= 2 grid steps (v7x megacore)
        floor_rows = min(min_rows, (batch * seq) // 2)
        for d in reversed(divisors):
            if batch // d >= 2 and d * seq >= floor_rows:
                bt = d
                break
    return bt


@functools.partial(jax.jit, static_argnums=(3,))
def fused_mha(x, w, b, nheads):
    B, S, D = x.shape
    Dh = D // nheads
    scale = 1.0 / math.sqrt(Dh)
    bt = _choose_batch_tile(B, S)

    # bf16 MXU operands (halves weight/activation DMA bytes too); accumulation stays f32.
    x_bf = x.astype(jnp.bfloat16)
    w_bf = w.astype(jnp.bfloat16)
    b2d = b.reshape(1, 3 * D).astype(jnp.float32)

    kernel = functools.partial(_fused_mha_kernel, nheads=nheads, scale=scale)

    out = pl.pallas_call(
        kernel,
        # bf16 output: result already comes from bf16 MXU operands; halves writeback bytes
        # and masked-store count.
        out_shape=jax.ShapeDtypeStruct((B, nheads, S, Dh), jnp.bfloat16),
        grid_spec=pltpu.PrefetchScalarGridSpec(
            num_scalar_prefetch=0,
            grid=(B // bt,),
            in_specs=[
                pl.BlockSpec((bt, S, D), lambda i: (i, 0, 0)),        # batch-tile of activations
                pl.BlockSpec((D, 3 * D), lambda i: (0, 0)),           # weight: resident in VMEM
                pl.BlockSpec((1, 3 * D), lambda i: (0, 0)),           # bias:   resident in VMEM
            ],
            out_specs=pl.BlockSpec((bt, nheads, S, Dh), lambda i: (i, 0, 0, 0)),
        ),
        compiler_params=pltpu.CompilerParams(
            dimension_semantics=("parallel",),           # shard batch tiles across TensorCores
            # Footprint today is ~1-2 MiB (w 384 KiB bf16, qkv/scores tiny); 32 MiB also fits
            # v7x's scoped limit.  Re-derive when adding flash-style S tiling.
            vmem_limit_bytes=32 * 1024 * 1024,
        ),
    )(x_bf, w_bf, b2d)

    # Reproduce the module's raw .view(B, S, H*Dh) on the contiguous (B, H, S, Dh) tensor.
    # Row-major contiguous reshape -> free.
    return out.reshape(B, S, nheads * Dh)


# ----------------------------- module wrapper -----------------------------
class MultiHeadAttentionPallas:
    def __init__(self, nheads=4, dimension=256, key=None):
        assert dimension % nheads == 0, "Dimension must be divisible by nheads"
        self.nheads = nheads
        self.dimension = dimension
        if key is None:
            key = jax.random.PRNGKey(0)
        kw, kb = jax.random.split(key)
        # nn.Linear(dimension, 3*dimension): weight (3D, D), bias (3D,), init U(-1/sqrt(D), 1/sqrt(D)).
        # We store W transposed as (D, 3D) so y = x @ W + b.
        bound = 1.0 / math.sqrt(dimension)
        self.w = jax.random.uniform(kw, (dimension, 3 * dimension),
                                    minval=-bound, maxval=bound, dtype=jnp.float32)
        self.b = jax.random.uniform(kb, (3 * dimension,),
                                    minval=-bound, maxval=bound, dtype=jnp.float32)

    def __call__(self, x):
        B, S, D = x.shape
        assert D == self.dimension
        return fused_mha(x, self.w, self.b, self.nheads)


# ----------------------------- reference (pure JAX, f32) -----------------------------
def reference_forward(x, w, b, nheads):
    B, S, D = x.shape
    Dh = D // nheads
    qkv = x.reshape(B * S, D) @ w + b
    qkv = qkv.reshape(B, S, 3 * D)
    q, k, v = jnp.split(qkv, 3, axis=-1)
    q = q.reshape(B, S, nheads, Dh).transpose(0, 2, 1, 3)
    k = k.reshape(B, S, nheads, Dh).transpose(0, 2, 1, 3)
    v = v.reshape(B, S, nheads, Dh).transpose(0, 2, 1, 3)
    s = jnp.einsum("bhqd,bhkd->bhqk", q, k) / math.sqrt(Dh)
    p = jax.nn.softmax(s, axis=-1)
    o = jnp.einsum("bhqk,bhkd->bhqd", p, v)
    # Same raw .view(B, S, H*Dh) quirk as the PyTorch module.
    return o.reshape(B, S, nheads * Dh)


if __name__ == "__main__":
    B, S, H, D = 2, 8, 4, 256
    key = jax.random.PRNGKey(0)
    kx, kp = jax.random.split(key)
    x = jax.random.normal(kx, (B, S, D), dtype=jnp.float32)

    mha = MultiHeadAttentionPallas(nheads=H, dimension=D, key=kp)
    out = jax.block_until_ready(mha(x))

    ref = reference_forward(x, mha.w, mha.b, H)
    assert out.shape == (B, S, D), out.shape
    # bf16 MXU operands / bf16 output + approx reciprocal -> looser tolerance vs pure-f32 reference.
    assert jnp.allclose(out.astype(jnp.float32), ref, atol=5e-2, rtol=5e-2), \
        float(jnp.max(jnp.abs(out.astype(jnp.float32) - ref)))

    print("KERNEL_OK")
</pallas_src>

<mosaic_0001>
module attributes {stable_mosaic.version = 11 : i64} {
  func.func @_fused_mha_kernel(%arg0: i32, %arg1: memref<1x8x256xbf16, #tpu.memory_space<vmem>>, %arg2: memref<256x768xbf16, #tpu.memory_space<vmem>>, %arg3: memref<1x768xf32, #tpu.memory_space<vmem>>, %arg4: memref<1x4x8x64xbf16, #tpu.memory_space<vmem>>) attributes {dimension_semantics = [#tpu.dimension_semantics<parallel>], iteration_bounds = array<i64: 2>, scalar_prefetch = 0 : i64, scratch_operands = 0 : i64, tpu.core_type = #tpu.core_type<tc>, window_params = [{transform_indices = @transform_0, window_bounds = array<i64: 1, 8, 256>}, {pipeline_mode = #tpu.pipeline_mode<synchronous>, transform_indices = @transform_1, window_bounds = array<i64: 256, 768>}, {pipeline_mode = #tpu.pipeline_mode<synchronous>, transform_indices = @transform_2, window_bounds = array<i64: 1, 768>}, {transform_indices = @transform_3, window_bounds = array<i64: 1, 4, 8, 64>}]} {
    %c0 = arith.constant 0 : index
    %c0_0 = arith.constant 0 : index
    %c0_1 = arith.constant 0 : index
    %0 = vector.load %arg1[%c0, %c0_0, %c0_1] : memref<1x8x256xbf16, #tpu.memory_space<vmem>>, vector<1x8x256xbf16>
    %1 = vector.shape_cast %0 : vector<1x8x256xbf16> to vector<8x256xbf16>
    %c0_2 = arith.constant 0 : index
    %c0_3 = arith.constant 0 : index
    %2 = vector.load %arg2[%c0_2, %c0_3] : memref<256x768xbf16, #tpu.memory_space<vmem>>, vector<256x768xbf16>
    %cst = arith.constant dense<0.000000e+00> : vector<8x768xf32>
    %3 = tpu.matmul %1, %2, %cst {dimension_numbers = #tpu.dot_dimension_numbers<[1], [0], [0], [1], [0, 0, 1, 1], [], []>} : vector<8x256xbf16>, vector<256x768xbf16>, vector<8x768xf32> -> vector<8x768xf32>
    %c0_4 = arith.constant 0 : index
    %c0_5 = arith.constant 0 : index
    %4 = vector.load %arg3[%c0_4, %c0_5] : memref<1x768xf32, #tpu.memory_space<vmem>>, vector<1x768xf32>
    %5 = vector.broadcast %4 : vector<1x768xf32> to vector<8x768xf32>
    %6 = arith.addf %3, %5 : vector<8x768xf32>
    %7 = arith.truncf %6 : vector<8x768xf32> to vector<8x768xbf16>
    %8 = vector.extract_strided_slice %7 {offsets = [0, 0], sizes = [8, 128], strides = [1, 1]} : vector<8x768xbf16> to vector<8x128xbf16>
    %9 = vector.extract_strided_slice %7 {offsets = [0, 256], sizes = [8, 128], strides = [1, 1]} : vector<8x768xbf16> to vector<8x128xbf16>
    %10 = vector.extract_strided_slice %7 {offsets = [0, 512], sizes = [8, 128], strides = [1, 1]} : vector<8x768xbf16> to vector<8x128xbf16>
    %11 = vector.extract_strided_slice %8 {offsets = [0, 0], sizes = [8, 64], strides = [1, 1]} : vector<8x128xbf16> to vector<8x64xbf16>
    %12 = vector.shape_cast %11 : vector<8x64xbf16> to vector<1x8x64xbf16>
    %13 = vector.extract_strided_slice %9 {offsets = [0, 0], sizes = [8, 64], strides = [1, 1]} : vector<8x128xbf16> to vector<8x64xbf16>
    %14 = vector.shape_cast %13 : vector<8x64xbf16> to vector<1x8x64xbf16>
    %15 = vector.extract_strided_slice %10 {offsets = [0, 0], sizes = [8, 64], strides = [1, 1]} : vector<8x128xbf16> to vector<8x64xbf16>
    %16 = vector.shape_cast %15 : vector<8x64xbf16> to vector<1x8x64xbf16>
    "tpu.trace_start"() <{level = 10 : i32, message = "bqd,bkd->bqk"}> : () -> ()
    %cst_6 = arith.constant dense<0.000000e+00> : vector<1x8x8xf32>
    %17 = tpu.matmul %12, %14, %cst_6 {dimension_numbers = #tpu.dot_dimension_numbers<[2], [2], [1], [1], [0, 0, 0, 1, 1, 1], [0], [0]>} : vector<1x8x64xbf16>, vector<1x8x64xbf16>, vector<1x8x8xf32> -> vector<1x8x8xf32>
    "tpu.trace_stop"() : () -> ()
    %cst_7 = arith.constant dense<0xFF800000> : vector<1x8xf32>
    %18 = vector.multi_reduction <maximumf>, %17, %cst_7 [2] : vector<1x8x8xf32> to vector<1x8xf32>
    %19 = vector.shape_cast %18 : vector<1x8xf32> to vector<1x8x1xf32>
    %20 = vector.broadcast %19 : vector<1x8x1xf32> to vector<1x8x8xf32>
    %21 = arith.subf %17, %20 : vector<1x8x8xf32>
    %cst_8 = arith.constant 1.250000e-01 : f32
    %22 = vector.broadcast %cst_8 : f32 to vector<1x8x8xf32>
    %23 = arith.mulf %21, %22 : vector<1x8x8xf32>
    %24 = math.exp %23 : vector<1x8x8xf32>
    %cst_9 = arith.constant dense<0.000000e+00> : vector<1x8xf32>
    %25 = vector.multi_reduction <add>, %24, %cst_9 [2] : vector<1x8x8xf32> to vector<1x8xf32>
    %26 = vector.shape_cast %25 : vector<1x8xf32> to vector<1x8x1xf32>
    %27 = arith.truncf %24 : vector<1x8x8xf32> to vector<1x8x8xbf16>
    "tpu.trace_start"() <{level = 10 : i32, message = "bqk,bkd->bqd"}> : () -> ()
    %cst_10 = arith.constant dense<0.000000e+00> : vector<1x8x64xf32>
    %28 = tpu.matmul %27, %16, %cst_10 {dimension_numbers = #tpu.dot_dimension_numbers<[2], [1], [1], [2], [0, 0, 0, 1, 1, 2], [0], [0]>} : vector<1x8x8xbf16>, vector<1x8x64xbf16>, vector<1x8x64xf32> -> vector<1x8x64xf32>
    "tpu.trace_stop"() : () -> ()
    %29 = tpu.reciprocal %26 {approx = true} : vector<1x8x1xf32> -> vector<1x8x1xf32>
    %30 = vector.broadcast %29 : vector<1x8x1xf32> to vector<1x8x64xf32>
    %31 = arith.mulf %28, %30 : vector<1x8x64xf32>
    %32 = vector.extract_strided_slice %8 {offsets = [0, 64], sizes = [8, 64], strides = [1, 1]} : vector<8x128xbf16> to vector<8x64xbf16>
    %33 = vector.shape_cast %32 : vector<8x64xbf16> to vector<1x8x64xbf16>
    %34 = vector.extract_strided_slice %9 {offsets = [0, 64], sizes = [8, 64], strides = [1, 1]} : vector<8x128xbf16> to vector<8x64xbf16>
    %35 = vector.shape_cast %34 : vector<8x64xbf16> to vector<1x8x64xbf16>
    %36 = vector.extract_strided_slice %10 {offsets = [0, 64], sizes = [8, 64], strides = [1, 1]} : vector<8x128xbf16> to vector<8x64xbf16>
    %37 = vector.shape_cast %36 : vector<8x64xbf16> to vector<1x8x64xbf16>
    "tpu.trace_start"() <{level = 10 : i32, message = "bqd,bkd->bqk"}> : () -> ()
    %cst_11 = arith.constant dense<0.000000e+00> : vector<1x8x8xf32>
    %38 = tpu.matmul %33, %35, %cst_11 {dimension_numbers = #tpu.dot_dimension_numbers<[2], [2], [1], [1], [0, 0, 0, 1, 1, 1], [0], [0]>} : vector<1x8x64xbf16>, vector<1x8x64xbf16>, vector<1x8x8xf32> -> vector<1x8x8xf32>
    "tpu.trace_stop"() : () -> ()
    %cst_12 = arith.constant dense<0xFF800000> : vector<1x8xf32>
    %39 = vector.multi_reduction <maximumf>, %38, %cst_12 [2] : vector<1x8x8xf32> to vector<1x8xf32>
    %40 = vector.shape_cast %39 : vector<1x8xf32> to vector<1x8x1xf32>
    %41 = vector.broadcast %40 : vector<1x8x1xf32> to vector<1x8x8xf32>
    %42 = arith.subf %38, %41 : vector<1x8x8xf32>
    %cst_13 = arith.constant 1.250000e-01 : f32
    %43 = vector.broadcast %cst_13 : f32 to vector<1x8x8xf32>
    %44 = arith.mulf %42, %43 : vector<1x8x8xf32>
    %45 = math.exp %44 : vector<1x8x8xf32>
    %cst_14 = arith.constant dense<0.000000e+00> : vector<1x8xf32>
    %46 = vector.multi_reduction <add>, %45, %cst_14 [2] : vector<1x8x8xf32> to vector<1x8xf32>
    %47 = vector.shape_cast %46 : vector<1x8xf32> to vector<1x8x1xf32>
    %48 = arith.truncf %45 : vector<1x8x8xf32> to vector<1x8x8xbf16>
    "tpu.trace_start"() <{level = 10 : i32, message = "bqk,bkd->bqd"}> : () -> ()
    %cst_15 = arith.constant dense<0.000000e+00> : vector<1x8x64xf32>
    %49 = tpu.matmul %48, %37, %cst_15 {dimension_numbers = #tpu.dot_dimension_numbers<[2], [1], [1], [2], [0, 0, 0, 1, 1, 2], [0], [0]>} : vector<1x8x8xbf16>, vector<1x8x64xbf16>, vector<1x8x64xf32> -> vector<1x8x64xf32>
    "tpu.trace_stop"() : () -> ()
    %50 = tpu.reciprocal %47 {approx = true} : vector<1x8x1xf32> -> vector<1x8x1xf32>
    %51 = vector.broadcast %50 : vector<1x8x1xf32> to vector<1x8x64xf32>
    %52 = arith.mulf %49, %51 : vector<1x8x64xf32>
    %53 = vector.extract_strided_slice %7 {offsets = [0, 128], sizes = [8, 128], strides = [1, 1]} : vector<8x768xbf16> to vector<8x128xbf16>
    %54 = vector.extract_strided_slice %7 {offsets = [0, 384], sizes = [8, 128], strides = [1, 1]} : vector<8x768xbf16> to vector<8x128xbf16>
    %55 = vector.extract_strided_slice %7 {offsets = [0, 640], sizes = [8, 128], strides = [1, 1]} : vector<8x768xbf16> to vector<8x128xbf16>
    %56 = vector.extract_strided_slice %53 {offsets = [0, 0], sizes = [8, 64], strides = [1, 1]} : vector<8x128xbf16> to vector<8x64xbf16>
    %57 = vector.shape_cast %56 : vector<8x64xbf16> to vector<1x8x64xbf16>
    %58 = vector.extract_strided_slice %54 {offsets = [0, 0], sizes = [8, 64], strides = [1, 1]} : vector<8x128xbf16> to vector<8x64xbf16>
    %59 = vector.shape_cast %58 : vector<8x64xbf16> to vector<1x8x64xbf16>
    %60 = vector.extract_strided_slice %55 {offsets = [0, 0], sizes = [8, 64], strides = [1, 1]} : vector<8x128xbf16> to vector<8x64xbf16>
    %61 = vector.shape_cast %60 : vector<8x64xbf16> to vector<1x8x64xbf16>
    "tpu.trace_start"() <{level = 10 : i32, message = "bqd,bkd->bqk"}> : () -> ()
    %cst_16 = arith.constant dense<0.000000e+00> : vector<1x8x8xf32>
    %62 = tpu.matmul %57, %59, %cst_16 {dimension_numbers = #tpu.dot_dimension_numbers<[2], [2], [1], [1], [0, 0, 0, 1, 1, 1], [0], [0]>} : vector<1x8x64xbf16>, vector<1x8x64xbf16>, vector<1x8x8xf32> -> vector<1x8x8xf32>
    "tpu.trace_stop"() : () -> ()
    %cst_17 = arith.constant dense<0xFF800000> : vector<1x8xf32>
    %63 = vector.multi_reduction <maximumf>, %62, %cst_17 [2] : vector<1x8x8xf32> to vector<1x8xf32>
    %64 = vector.shape_cast %63 : vector<1x8xf32> to vector<1x8x1xf32>
    %65 = vector.broadcast %64 : vector<1x8x1xf32> to vector<1x8x8xf32>
    %66 = arith.subf %62, %65 : vector<1x8x8xf32>
    %cst_18 = arith.constant 1.250000e-01 : f32
    %67 = vector.broadcast %cst_18 : f32 to vector<1x8x8xf32>
    %68 = arith.mulf %66, %67 : vector<1x8x8xf32>
    %69 = math.exp %68 : vector<1x8x8xf32>
    %cst_19 = arith.constant dense<0.000000e+00> : vector<1x8xf32>
    %70 = vector.multi_reduction <add>, %69, %cst_19 [2] : vector<1x8x8xf32> to vector<1x8xf32>
    %71 = vector.shape_cast %70 : vector<1x8xf32> to vector<1x8x1xf32>
    %72 = arith.truncf %69 : vector<1x8x8xf32> to vector<1x8x8xbf16>
    "tpu.trace_start"() <{level = 10 : i32, message = "bqk,bkd->bqd"}> : () -> ()
    %cst_20 = arith.constant dense<0.000000e+00> : vector<1x8x64xf32>
    %73 = tpu.matmul %72, %61, %cst_20 {dimension_numbers = #tpu.dot_dimension_numbers<[2], [1], [1], [2], [0, 0, 0, 1, 1, 2], [0], [0]>} : vector<1x8x8xbf16>, vector<1x8x64xbf16>, vector<1x8x64xf32> -> vector<1x8x64xf32>
    "tpu.trace_stop"() : () -> ()
    %74 = tpu.reciprocal %71 {approx = true} : vector<1x8x1xf32> -> vector<1x8x1xf32>
    %75 = vector.broadcast %74 : vector<1x8x1xf32> to vector<1x8x64xf32>
    %76 = arith.mulf %73, %75 : vector<1x8x64xf32>
    %77 = vector.extract_strided_slice %53 {offsets = [0, 64], sizes = [8, 64], strides = [1, 1]} : vector<8x128xbf16> to vector<8x64xbf16>
    %78 = vector.shape_cast %77 : vector<8x64xbf16> to vector<1x8x64xbf16>
    %79 = vector.extract_strided_slice %54 {offsets = [0, 64], sizes = [8, 64], strides = [1, 1]} : vector<8x128xbf16> to vector<8x64xbf16>
    %80 = vector.shape_cast %79 : vector<8x64xbf16> to vector<1x8x64xbf16>
    %81 = vector.extract_strided_slice %55 {offsets = [0, 64], sizes = [8, 64], strides = [1, 1]} : vector<8x128xbf16> to vector<8x64xbf16>
    %82 = vector.shape_cast %81 : vector<8x64xbf16> to vector<1x8x64xbf16>
    "tpu.trace_start"() <{level = 10 : i32, message = "bqd,bkd->bqk"}> : () -> ()
    %cst_21 = arith.constant dense<0.000000e+00> : vector<1x8x8xf32>
    %83 = tpu.matmul %78, %80, %cst_21 {dimension_numbers = #tpu.dot_dimension_numbers<[2], [2], [1], [1], [0, 0, 0, 1, 1, 1], [0], [0]>} : vector<1x8x64xbf16>, vector<1x8x64xbf16>, vector<1x8x8xf32> -> vector<1x8x8xf32>
    "tpu.trace_stop"() : () -> ()
    %cst_22 = arith.constant dense<0xFF800000> : vector<1x8xf32>
    %84 = vector.multi_reduction <maximumf>, %83, %cst_22 [2] : vector<1x8x8xf32> to vector<1x8xf32>
    %85 = vector.shape_cast %84 : vector<1x8xf32> to vector<1x8x1xf32>
    %86 = vector.broadcast %85 : vector<1x8x1xf32> to vector<1x8x8xf32>
    %87 = arith.subf %83, %86 : vector<1x8x8xf32>
    %cst_23 = arith.constant 1.250000e-01 : f32
    %88 = vector.broadcast %cst_23 : f32 to vector<1x8x8xf32>
    %89 = arith.mulf %87, %88 : vector<1x8x8xf32>
    %90 = math.exp %89 : vector<1x8x8xf32>
    %cst_24 = arith.constant dense<0.000000e+00> : vector<1x8xf32>
    %91 = vector.multi_reduction <add>, %90, %cst_24 [2] : vector<1x8x8xf32> to vector<1x8xf32>
    %92 = vector.shape_cast %91 : vector<1x8xf32> to vector<1x8x1xf32>
    %93 = arith.truncf %90 : vector<1x8x8xf32> to vector<1x8x8xbf16>
    "tpu.trace_start"() <{level = 10 : i32, message = "bqk,bkd->bqd"}> : () -> ()
    %cst_25 = arith.constant dense<0.000000e+00> : vector<1x8x64xf32>
    %94 = tpu.matmul %93, %82, %cst_25 {dimension_numbers = #tpu.dot_dimension_numbers<[2], [1], [1], [2], [0, 0, 0, 1, 1, 2], [0], [0]>} : vector<1x8x8xbf16>, vector<1x8x64xbf16>, vector<1x8x64xf32> -> vector<1x8x64xf32>
    "tpu.trace_stop"() : () -> ()
    %95 = tpu.reciprocal %92 {approx = true} : vector<1x8x1xf32> -> vector<1x8x1xf32>
    %96 = vector.broadcast %95 : vector<1x8x1xf32> to vector<1x8x64xf32>
    %97 = arith.mulf %94, %96 : vector<1x8x64xf32>
    %98 = vector.shape_cast %31 : vector<1x8x64xf32> to vector<1x1x8x64xf32>
    %99 = vector.shape_cast %52 : vector<1x8x64xf32> to vector<1x1x8x64xf32>
    %100 = vector.shape_cast %76 : vector<1x8x64xf32> to vector<1x1x8x64xf32>
    %101 = vector.shape_cast %97 : vector<1x8x64xf32> to vector<1x1x8x64xf32>
    %102 = tpu.concatenate %98, %99, %100, %101 in 1 : vector<1x1x8x64xf32>, vector<1x1x8x64xf32>, vector<1x1x8x64xf32>, vector<1x1x8x64xf32> -> vector<1x4x8x64xf32>
    %103 = arith.truncf %102 : vector<1x4x8x64xf32> to vector<1x4x8x64xbf16>
    %c0_26 = arith.constant 0 : index
    %c0_27 = arith.constant 0 : index
    %c0_28 = arith.constant 0 : index
    %c0_29 = arith.constant 0 : index
    %104 = vector.load %arg4[%c0_26, %c0_27, %c0_28, %c0_29] : memref<1x4x8x64xbf16, #tpu.memory_space<vmem>>, vector<1x4x8x64xbf16>
    tpu.vector_store %arg4[%c0_26, %c0_27, %c0_28, %c0_29], %103 {strides = array<i32>} : memref<1x4x8x64xbf16, #tpu.memory_space<vmem>>, vector<1x4x8x64xbf16>,
    return
  }
  func.func @transform_0(%arg0: i32) -> (i32, i32, i32) {
    %c0_i32 = arith.constant 0 : i32
    %c0_i32_0 = arith.constant 0 : i32
    %c0_i32_1 = arith.constant 0 : i32
    return %arg0, %c0_i32, %c0_i32_0 : i32, i32, i32
  }
  func.func @transform_1(%arg0: i32) -> (i32, i32) {
    %c0_i32 = arith.constant 0 : i32
    %c0_i32_0 = arith.constant 0 : i32
    %c0_i32_1 = arith.constant 0 : i32
    return %c0_i32, %c0_i32_0 : i32, i32
  }
  func.func @transform_2(%arg0: i32) -> (i32, i32) {
    %c0_i32 = arith.constant 0 : i32
    %c0_i32_0 = arith.constant 0 : i32
    %c0_i32_1 = arith.constant 0 : i32
    return %c0_i32, %c0_i32_0 : i32, i32
  }
  func.func @transform_3(%arg0: i32) -> (i32, i32, i32, i32) {
    %c0_i32 = arith.constant 0 : i32
    %c0_i32_0 = arith.constant 0 : i32
    %c0_i32_1 = arith.constant 0 : i32
    %c0_i32_2 = arith.constant 0 : i32
    return %arg0, %c0_i32, %c0_i32_0, %c0_i32_1 : i32, i32, i32, i32
  }
}

</mosaic_0001>

<bundles_post_ra>
// kernel: fused_mha.1
= control target key start
LH: loop header
LB: loop body
LE: loop exit
PB: predicated region body
PF: predicated region fallthrough
CT: control target
= control target key end

     0   :  { %s1809_s12 = smov 0   ;;  %s2224_s0 = inlined_call_operand.vmem [shape: bf16[2,8,256], index: 0, kind: input, shape index: {}]   ;;  %s2225_s1 = inlined_call_operand.vmem [shape: bf16[256,768], index: 1, kind: input, shape index: {}]   ;;  %s2226_s2 = inlined_call_operand.vmem [shape: f32[1,768], index: 2, kind: input, shape index: {}]   ;;  %s2227_s3 = inlined_call_operand.vmem [shape: bf16[2,4,8,64], index: 3, kind: output, shape index: {}]  }
   0x1 LB: > { %s1422_s13 = sadd.s32 4294967295, %s1784_s12   ;;  %p1426_p0 = scmp.ge.s32.totalorder %s1784_s12, 1  ;;  %s1784_s12 = sphi %s1809_s12, %s13_s12  }
   0x2   : > { %p137_p1 = scmp.lt.s32.totalorder %s1784_s12, 3 }
   0x4   : > { %p138_p2 = pnand %p1426_p0, %p137_p1 }
   0x5   : > { %p161_p3 = scmp.lt.s32.totalorder (!%p138_p2), %s1422_s13, 1  ;;  %s1788_s4 = smov (!%p138_p2), 64  }
   0x6   : > { %141 = sbr.rel (%p138_p2) target bundleno = 1920 (0x780), region = 32 }
   0xb   : > { %v1616_v0 = vld [vmem:[%s2225_s1 + $0x15c] ss:$24 sps:$4 sm:$0xff]   ;;  %v1618_v1 = vld [vmem:[%s2225_s1 + $0x158] ss:$24 sps:$4 sm:$0xff]   ;;  %v1622_v4 = vld [vmem:[%s2225_s1 + $0x12c] ss:$24 sps:$4 sm:$0xff]  }
   0xc   : > { %829 = vmatprep.subr.bf16.mxu1 %v1616_v0  ;;  %v1619_v2 = vld [vmem:[%s2225_s1 + $0x154] ss:$24 sps:$4 sm:$0xff]   ;;  %v1621_v3 = vld [vmem:[%s2225_s1 + $0x150] ss:$24 sps:$4 sm:$0xff]   ;;  %v1625_v6 = vld [vmem:[%s2225_s1 + $0x124] ss:$24 sps:$4 sm:$0xff]  }
   0xd   : > { %830 = vmatpush1.bf16.msra.mxu1 %v1618_v1  ;;  %v1624_v5 = vld [vmem:[%s2225_s1 + $0x128] ss:$24 sps:$4 sm:$0xff]   ;;  %788 = vmatprep.subr.bf16.mxu0 %v1619_v2  ;;  %v1628_v8 = vld [vmem:[%s2225_s1 + $0xfc] ss:$24 sps:$4 sm:$0xff]   ;;  %v1630_v9 = vld [vmem:[%s2225_s1 + $0xf8] ss:$24 sps:$4 sm:$0xff]  }
   0xe   : > { %789 = vmatpush1.bf16.msra.mxu0 %v1621_v3  ;;  %831 = vmatprep.subr.bf16.mxu1 %v1622_v4  ;;  %v1627_v7 = vld [vmem:[%s2225_s1 + $0x120] ss:$24 sps:$4 sm:$0xff]   ;;  %v1631_v10 = vld [vmem:[%s2225_s1 + $0xf4] ss:$24 sps:$4 sm:$0xff]   ;;  %v1633_v12 = vld [vmem:[%s2225_s1 + $0xf0] ss:$24 sps:$4 sm:$0xff]  }
   0xf   : > { %790 = vmatprep.subr.bf16.mxu0 %v1625_v6  ;;  %v1634_v11 = vld [vmem:[%s2225_s1 + $0xcc] ss:$24 sps:$4 sm:$0xff]   ;;  %v1636_v14 = vld [vmem:[%s2225_s1 + $0xc8] ss:$24 sps:$4 sm:$0xff]   ;;  %v1640_v15 = vld [vmem:[%s2225_s1 + $0x9c] ss:$24 sps:$4 sm:$0xff]  }
  0x10   : > { %v1637_v13 = vld [vmem:[%s2225_s1 + $0xc4] ss:$24 sps:$4 sm:$0xff]   ;;  %v1639_v16 = vld [vmem:[%s2225_s1 + $0xc0] ss:$24 sps:$4 sm:$0xff]   ;;  %v1643_v17 = vld [vmem:[%s2225_s1 + $0x94] ss:$24 sps:$4 sm:$0xff]  }
  0x11   : > { %832 = vmatpush1.bf16.msra.mxu1 %v1624_v5  ;;  %v1642_v18 = vld [vmem:[%s2225_s1 + $0x98] ss:$24 sps:$4 sm:$0xff]   ;;  %v1646_v19 = vld [vmem:[%s2225_s1 + $0x6c] ss:$24 sps:$4 sm:$0xff]   ;;  %v1648_v22 = vld [vmem:[%s2225_s1 + $0x68] ss:$24 sps:$4 sm:$0xff]  }
  0x12   : > { %833 = vmatprep.subr.bf16.mxu1 %v1628_v8  ;;  %791 = vmatpush1.bf16.msra.mxu0 %v1627_v7  ;;  %v1645_v20 = vld [vmem:[%s2225_s1 + $0x90] ss:$24 sps:$4 sm:$0xff]   ;;  %v1649_v21 = vld [vmem:[%s2225_s1 + $0x64] ss:$24 sps:$4 sm:$0xff]   ;;  %v1651_v24 = vld [vmem:[%s2225_s1 + $0x60] ss:$24 sps:$4 sm:$0xff]  }
  0x13   : > { %792 = vmatprep.subr.bf16.mxu0 %v1631_v10  ;;  %v1652_v23 = vld [vmem:[%s2225_s1 + $0x3c] ss:$24 sps:$4 sm:$0xff]   ;;  %v1654_v26 = vld [vmem:[%s2225_s1 + $0x38] ss:$24 sps:$4 sm:$0xff]   ;;  %v1658_v27 = vld [vmem:[%s2225_s1 + $0xc] ss:$24 sps:$4 sm:$0xff]  }
  0x14   : > { %v1655_v25 = vld [vmem:[%s2225_s1 + $0x34] ss:$24 sps:$4 sm:$0xff]   ;;  %v1657_v28 = vld [vmem:[%s2225_s1 + $0x30] ss:$24 sps:$4 sm:$0xff]   ;;  %v1661_v29 = vld [vmem:[%s2225_s1 + $0x4] ss:$24 sps:$4 sm:$0xff]  }
  0x15   : > { %834 = vmatpush1.bf16.msra.mxu1 %v1630_v9  ;;  %v1660_v30 = vld [vmem:[%s2225_s1 + $0x8] ss:$24 sps:$4 sm:$0xff]   ;;  %v1664_v31 = vld [vmem:[%s2225_s1 + $0x2dc] ss:$24 sps:$4 sm:$0xff]   ;;  %v1666_v34 = vld [vmem:[%s2225_s1 + $0x2d8] ss:$24 sps:$4 sm:$0xff]  }
  0x16   : > { %835 = vmatprep.subr.bf16.mxu1 %v1634_v11  ;;  %793 = vmatpush1.bf16.msra.mxu0 %v1633_v12  ;;  %v1663_v32 = vld [vmem:[%s2225_s1] ss:$24 sps:$4 sm:$0xff]   ;;  %v1667_v33 = vld [vmem:[%s2225_s1 + $0x2d4] ss:$24 sps:$4 sm:$0xff]   ;;  %s2229_s13 = smov (!%p161_p3, %s1422_s13), 1  ;;  %v1786_v3 = vmov 0.0  }
  0x17   : > { %794 = vmatprep.subr.bf16.mxu0 %v1637_v13  ;;  %v1670_v35 = vld [vmem:[%s2225_s1 + $0x2ac] ss:$24 sps:$4 sm:$0xff]   ;;  %v1669_v36 = vld [vmem:[%s2225_s1 + $0x2d0] ss:$24 sps:$4 sm:$0xff]   ;;  %v1676_v39 = vld [vmem:[%s2225_s1 + $0x27c] ss:$24 sps:$4 sm:$0xff]  }
  0x18   : > { %v1673_v37 = vld [vmem:[%s2225_s1 + $0x2a4] ss:$24 sps:$4 sm:$0xff]   ;;  %v1672_v38 = vld [vmem:[%s2225_s1 + $0x2a8] ss:$24 sps:$4 sm:$0xff]   ;;  %s1539_s19 = sshll.u32 %s2229_s13, 3  ;;  %vm1787_vm0 = vmmov 0  }
  0x19   : > { %836 = vmatpush1.bf16.msra.mxu1 %v1636_v14  ;;  %v1675_v40 = vld [vmem:[%s2225_s1 + $0x2a0] ss:$24 sps:$4 sm:$0xff]   ;;  %v1679_v41 = vld [vmem:[%s2225_s1 + $0x274] ss:$24 sps:$4 sm:$0xff]   ;;  %s165_s28 = scalar_lea.vmem %s2224_s0, %s1539_s19  ;;  %v1681_v44 = vld [vmem:[%s2225_s1 + $0x270] ss:$24 sps:$4 sm:$0xff]  }
  0x1a   : > { %837 = vmatprep.subr.bf16.mxu1 %v1640_v15  ;;  %795 = vmatpush1.bf16.msra.mxu0 %v1639_v16  ;;  %v1678_v42 = vld [vmem:[%s2225_s1 + $0x278] ss:$24 sps:$4 sm:$0xff]   ;;  %v1682_v43 = vld [vmem:[%s2225_s1 + $0x24c] ss:$24 sps:$4 sm:$0xff]   ;;  %v1684_v45 = vld [vmem:[%s2225_s1 + $0x248] ss:$24 sps:$4 sm:$0xff]  }
  0x1b   : > { %796 = vmatprep.subr.bf16.mxu0 %v1643_v17  ;;  %v1685_v46 = vld [vmem:[%s2225_s1 + $0x244] ss:$24 sps:$4 sm:$0xff]   ;;  %v1687_v48 = vld [vmem:[%s2225_s1 + $0x240] ss:$24 sps:$4 sm:$0xff]   ;;  %v1691_v51 = vld [vmem:[%s2225_s1 + $0x214] ss:$24 sps:$4 sm:$0xff]  }
  0x1c   : > { %v172_v47 = vld [vmem:[%s165_s28] sm:$0xff]  ;;  %v1688_v49 = vld [vmem:[%s2225_s1 + $0x21c] ss:$24 sps:$4 sm:$0xff]   ;;  %v1690_v52 = vld [vmem:[%s2225_s1 + $0x218] ss:$24 sps:$4 sm:$0xff]   ;;  %vm917_vm1 = vcmask 523264  }
  0x1d   : > { %838 = vmatpush1.bf16.msra.mxu1 %v1642_v18  ;;  %v1432_v50 = vcombine.high %v172_v47, %v172_v47  ;;  %v1694_v53 = vld [vmem:[%s2225_s1 + $0x1ec] ss:$24 sps:$4 sm:$0xff]   ;;  %v1693_v54 = vld [vmem:[%s2225_s1 + $0x210] ss:$24 sps:$4 sm:$0xff]   ;;  %v1700_v57 = vld [vmem:[%s2225_s1 + $0x1bc] ss:$24 sps:$4 sm:$0xff]   ;;  %v2019_v2 = vcombine.low %v172_v47, %v172_v47 }
  0x1e   : > { %839 = vmatprep.subr.bf16.mxu1 %v1646_v19  ;;  %797 = vmatpush1.bf16.msra.mxu0 %v1645_v20  ;;  %v1697_v55 = vld [vmem:[%s2225_s1 + $0x1e4] ss:$24 sps:$4 sm:$0xff]   ;;  %v1696_v56 = vld [vmem:[%s2225_s1 + $0x1e8] ss:$24 sps:$4 sm:$0xff]   ;;  %v1703_v59 = vld [vmem:[%s2225_s1 + $0x1b4] ss:$24 sps:$4 sm:$0xff]  }
  0x1f   : > { %798 = vmatprep.subr.bf16.mxu0 %v1649_v21  ;;  %861 = vmatprep.mubr.bf16.mxu1 %v1432_v50  ;;  %v1699_v58 = vld [vmem:[%s2225_s1 + $0x1e0] ss:$24 sps:$4 sm:$0xff]   ;;  %v1706_v61 = vld [vmem:[%s2225_s1 + $0x18c] ss:$24 sps:$4 sm:$0xff]   ;;  %v1705_v62 = vld [vmem:[%s2225_s1 + $0x1b0] ss:$24 sps:$4 sm:$0xff]  }
  0x20   : > { %820 = vmatprep.mubr.bf16.mxu0 %v1432_v50  ;;  %v1702_v60 = vld [vmem:[%s2225_s1 + $0x1b8] ss:$24 sps:$4 sm:$0xff]   ;;  %v1709_v63 = vld [vmem:[%s2225_s1 + $0x184] ss:$24 sps:$4 sm:$0xff]   ;;  %v1708_v0 = vld [vmem:[%s2225_s1 + $0x188] ss:$24 sps:$4 sm:$0xff]  }
  0x21   : > { %840 = vmatpush1.bf16.msra.mxu1 %v1648_v22  ;;  %v1712_v1 = vld [vmem:[%s2225_s1 + $0x180] ss:$24 sps:$4 sm:$0xff]   ;;  %v1716_v5 = vld [vmem:[%s2225_s1 + $0x164] ss:$24 sps:$4 sm:$0xff]   ;;  %v1719_v6 = vld [vmem:[%s2225_s1 + $0x134] ss:$24 sps:$4 sm:$0xff]  }
  0x22   : > { %841 = vmatprep.subr.bf16.mxu1 %v1652_v23  ;;  %799 = vmatpush1.bf16.msra.mxu0 %v1651_v24  ;;  %v1714_v4 = vld [vmem:[%s2225_s1 + $0x160] ss:$24 sps:$4 sm:$0xff]   ;;  %v1717_v7 = vld [vmem:[%s2225_s1 + $0x130] ss:$24 sps:$4 sm:$0xff]   ;;  %v1722_v8 = vld [vmem:[%s2225_s1 + $0x104] ss:$24 sps:$4 sm:$0xff]   ;;  %v271_v24 = vlaneseq }
  0x23   : > { %800 = vmatprep.subr.bf16.mxu0 %v1655_v25  ;;  %v1720_v9 = vld [vmem:[%s2225_s1 + $0x100] ss:$24 sps:$4 sm:$0xff]   ;;  %v1725_v10 = vld [vmem:[%s2225_s1 + $0xd4] ss:$24 sps:$4 sm:$0xff]   ;;  %v1723_v11 = vld [vmem:[%s2225_s1 + $0xd0] ss:$24 sps:$4 sm:$0xff]  }
  0x24   : > { %v1728_v12 = vld [vmem:[%s2225_s1 + $0xa4] ss:$24 sps:$4 sm:$0xff]   ;;  %v1726_v13 = vld [vmem:[%s2225_s1 + $0xa0] ss:$24 sps:$4 sm:$0xff]   ;;  %v1731_v14 = vld [vmem:[%s2225_s1 + $0x74] ss:$24 sps:$4 sm:$0xff]  }
  0x25   : > { %842 = vmatpush1.bf16.msra.mxu1 %v1654_v26  ;;  %v1729_v15 = vld [vmem:[%s2225_s1 + $0x70] ss:$24 sps:$4 sm:$0xff]   ;;  %v1734_v16 = vld [vmem:[%s2225_s1 + $0x44] ss:$24 sps:$4 sm:$0xff]   ;;  %v1732_v17 = vld [vmem:[%s2225_s1 + $0x40] ss:$24 sps:$4 sm:$0xff]  }
  0x26   : > { %843 = vmatprep.subr.bf16.mxu1 %v1658_v27  ;;  %801 = vmatpush1.bf16.msra.mxu0 %v1657_v28  ;;  %v1737_v18 = vld [vmem:[%s2225_s1 + $0x14] ss:$24 sps:$4 sm:$0xff]   ;;  %v1735_v19 = vld [vmem:[%s2225_s1 + $0x10] ss:$24 sps:$4 sm:$0xff]   ;;  %v1740_v20 = vld [vmem:[%s2225_s1 + $0x2e4] ss:$24 sps:$4 sm:$0xff]  }
  0x27   : > { %802 = vmatprep.subr.bf16.mxu0 %v1661_v29  ;;  %v1738_v21 = vld [vmem:[%s2225_s1 + $0x2e0] ss:$24 sps:$4 sm:$0xff]   ;;  %v1743_v22 = vld [vmem:[%s2225_s1 + $0x2b4] ss:$24 sps:$4 sm:$0xff]   ;;  %v1741_v23 = vld [vmem:[%s2225_s1 + $0x2b0] ss:$24 sps:$4 sm:$0xff]  }
  0x28   : > { %v2086_v25 = vshrl.u32 %v271_v24, 7  ;;  %v1744_v27 = vld [vmem:[%s2225_s1 + $0x280] ss:$24 sps:$4 sm:$0xff]   ;;  %v1746_v28 = vld [vmem:[%s2225_s1 + $0x284] ss:$24 sps:$4 sm:$0xff]   ;;  %vm964_vm2 = vcmask 64512  }
  0x29   : > { %844 = vmatpush1.bf16.msra.mxu1 %v1660_v30  ;;  %v2098_v29 = vld [vmem:[%s2226_s2] sm:$0x3f]  ;;  %v1749_v30 = vld [vmem:[%s2225_s1 + $0x254] ss:$24 sps:$4 sm:$0xff]   ;;  %vm979_vm3 = vcmask 1043456   ;;  %s1540_s11 = sshll.u32 %s2229_s13, 4 }
  0x2a   : > { %845 = vmatprep.subr.bf16.mxu1 %v1664_v31  ;;  %803 = vmatpush1.bf16.msra.mxu0 %v1663_v32  ;;  %v281_v26 = vsub.s32 2, %v2086_v25  ;;  %v273_v31 = vsub.s32 0, %v2086_v25  ;;  %v1747_v32 = vld [vmem:[%s2225_s1 + $0x250] ss:$24 sps:$4 sm:$0xff]   ;;  %s2194_s16 = scalar_lea.vmem %s2227_s3, %s1540_s11  ;;  %vm1362_vm4 = vcmask 519168  }
  0x2b   : > { %804 = vmatprep.subr.bf16.mxu0 %v1667_v33 }
  0x2c   : > { %v282_v33 = vrot.slane %v2098_v29, %v281_v26 }
  0x2d   : > { %846 = vmatpush2.bf16.msra.mxu1 %v1666_v34  ;;  %v1752_v34 = vld [vmem:[%s2225_s1 + $0x224] ss:$24 sps:$4 sm:$0xff]  }
  0x2e   : > { %847 = vmatprep.subr.bf16.mxu1 %v1670_v35  ;;  %805 = vmatpush2.bf16.msra.mxu0 %v1669_v36  ;;  %v274_v35 = vrot.slane %v2098_v29, %v273_v31  ;;  %v277_v31 = vsub.s32 1, %v2086_v25 }
  0x2f   : > { %806 = vmatprep.subr.bf16.mxu0 %v1673_v37  ;;  %v1750_v37 = vld [vmem:[%s2225_s1 + $0x220] ss:$24 sps:$4 sm:$0xff]  }
  0x31   : > { %848 = vmatpush2.bf16.msra.mxu1 %v1672_v38 }
  0x32   : > { %849 = vmatprep.subr.bf16.mxu1 %v1676_v39  ;;  %807 = vmatpush2.bf16.msra.mxu0 %v1675_v40  ;;  %v1755_v39 = vld [vmem:[%s2225_s1 + $0x1f4] ss:$24 sps:$4 sm:$0xff]  }
  0x33   : > { %808 = vmatprep.subr.bf16.mxu0 %v1679_v41 }
  0x35   : > { %850 = vmatpush2.bf16.msra.mxu1 %v1678_v42 }
  0x36   : > { %851 = vmatprep.subr.bf16.mxu1 %v1682_v43  ;;  %809 = vmatpush2.bf16.msra.mxu0 %v1681_v44 }
  0x37   : > { %810 = vmatprep.subr.bf16.mxu0 %v1685_v46  ;;  %v1753_v46 = vld [vmem:[%s2225_s1 + $0x1f0] ss:$24 sps:$4 sm:$0xff]  }
  0x39   : > { %852 = vmatpush2.bf16.msra.mxu1 %v1684_v45 }
  0x3a   : > { %853 = vmatprep.subr.bf16.mxu1 %v1688_v49  ;;  %811 = vmatpush2.bf16.msra.mxu0 %v1687_v48  ;;  %v1758_v49 = vld [vmem:[%s2225_s1 + $0x1c4] ss:$24 sps:$4 sm:$0xff]  }
  0x3b   : > { %812 = vmatprep.subr.bf16.mxu0 %v1691_v51 }
  0x3d   : > { %854 = vmatpush2.bf16.msra.mxu1 %v1690_v52 }
  0x3e   : > { %855 = vmatprep.subr.bf16.mxu1 %v1694_v53  ;;  %813 = vmatpush2.bf16.msra.mxu0 %v1693_v54  ;;  %v1756_v53 = vld [vmem:[%s2225_s1 + $0x1c0] ss:$24 sps:$4 sm:$0xff]   ;;  %v1761_v54 = vld [vmem:[%s2225_s1 + $0x194] ss:$24 sps:$4 sm:$0xff]  }
  0x3f   : > { %814 = vmatprep.subr.bf16.mxu0 %v1697_v55  ;;  %v1759_v55 = vld [vmem:[%s2225_s1 + $0x190] ss:$24 sps:$4 sm:$0xff]  }
  0x41   : > { %856 = vmatpush2.bf16.msra.mxu1 %v1696_v56 }
  0x42   : > { %857 = vmatprep.subr.bf16.mxu1 %v1700_v57  ;;  %815 = vmatpush2.bf16.msra.mxu0 %v1699_v58 }
  0x43   : > { %816 = vmatprep.subr.bf16.mxu0 %v1703_v59 }
  0x45   : > { %858 = vmatpush2.bf16.msra.mxu1 %v1702_v60 }
  0x46   : > { %859 = vmatprep.subr.bf16.mxu1 %v1706_v61  ;;  %817 = vmatpush2.bf16.msra.mxu0 %v1705_v62  ;;  %v289_v61 = vsub.s32 4, %v2086_v25 }
  0x47   : > { %818 = vmatprep.subr.bf16.mxu0 %v1709_v63 }
  0x48   : > { %v290_v63 = vrot.slane %v2098_v29, %v289_v61 }
  0x49   : > { %860 = vmatpush2.bf16.msra.mxu1 %v1708_v0 }
  0x4a   : > { %819 = vmatpush2.bf16.msra.mxu0 %v1712_v1  ;;  %1557 = vmatprep.subr.bf16.mxu1 %v1786_v3 }
  0x4b   : > { %870 = vmatprep.subr.bf16.mxu0 %v1716_v5 }
  0x4c   : > { %862 = vmatmul.mubr.bf16.vlgmr.msra.gmra.mxu1 %v2019_v2 }
  0x4d   : > { %821 = vmatmul.mubr.bf16.vlgmr.msra.gmra.mxu0 %v2019_v2  ;;  %1559 = vmatprep.mubr.msk.bf16.mxu1 %vm1787_vm0, %v1786_v3 }
  0x4e   : > { %902 = vmatprep.mubr.bf16.mxu0 %v1432_v50  ;;  %871 = vmatpush1.bf16.msra.mxu0 %v1714_v4 }
  0x4f   : > { %872 = vmatprep.subr.bf16.mxu0 %v1719_v6 }
  0x52   : > { %873 = vmatpush1.bf16.msra.mxu0 %v1717_v7 }
  0x53   : > { %874 = vmatprep.subr.bf16.mxu0 %v1722_v8 }
  0x56   : > { %875 = vmatpush1.bf16.msra.mxu0 %v1720_v9 }
  0x57   : > { %876 = vmatprep.subr.bf16.mxu0 %v1725_v10 }
  0x5a   : > { %877 = vmatpush1.bf16.msra.mxu0 %v1723_v11 }
  0x5b   : > { %878 = vmatprep.subr.bf16.mxu0 %v1728_v12 }
  0x5e   : > { %879 = vmatpush1.bf16.msra.mxu0 %v1726_v13 }
  0x5f   : > { %880 = vmatprep.subr.bf16.mxu0 %v1731_v14 }
  0x62   : > { %881 = vmatpush1.bf16.msra.mxu0 %v1729_v15 }
  0x63   : > { %882 = vmatprep.subr.bf16.mxu0 %v1734_v16 }
  0x66   : > { %883 = vmatpush1.bf16.msra.mxu0 %v1732_v17 }
  0x67   : > { %884 = vmatprep.subr.bf16.mxu0 %v1737_v18 }
  0x6a   : > { %885 = vmatpush1.bf16.msra.mxu0 %v1735_v19 }
  0x6b   : > { %886 = vmatprep.subr.bf16.mxu0 %v1740_v20 }
  0x6e   : > { %887 = vmatpush2.bf16.msra.mxu0 %v1738_v21 }
  0x6f   : > { %888 = vmatprep.subr.bf16.mxu0 %v1743_v22 }
  0x72   : > { %889 = vmatpush2.bf16.msra.mxu0 %v1741_v23 }
  0x73   : > { %890 = vmatprep.subr.bf16.mxu0 %v1746_v28 }
  0x76   : > { %891 = vmatpush2.bf16.msra.mxu0 %v1744_v27  ;;  %v285_v27 = vsub.s32 3, %v2086_v25 }
  0x77   : > { %892 = vmatprep.subr.bf16.mxu0 %v1749_v30 }
  0x78   : > { %v286_v30 = vrot.slane %v2098_v29, %v285_v27 }
  0x7a   : > { %893 = vmatpush2.bf16.msra.mxu0 %v1747_v32 }
  0x7b   : > { %894 = vmatprep.subr.bf16.mxu0 %v1752_v34  ;;  %v293_v34 = vsub.s32 5, %v2086_v25 }
  0x7e   : > { %895 = vmatpush2.bf16.msra.mxu0 %v1750_v37  ;;  %v294_v37 = vrot.slane %v2098_v29, %v293_v34 }
  0x7f   : > { %896 = vmatprep.subr.bf16.mxu0 %v1755_v39 }
  0x82   : > { %897 = vmatpush2.bf16.msra.mxu0 %v1753_v46 }
  0x83   : > { %898 = vmatprep.subr.bf16.mxu0 %v1758_v49 }
  0x86   : > { %899 = vmatpush2.bf16.msra.mxu0 %v1756_v53 }
  0x87   : > { %900 = vmatprep.subr.bf16.mxu0 %v1761_v54 }
  0x8a   : > { %901 = vmatpush2.bf16.msra.mxu0 %v1759_v55 }
  0x8d   : > { %903 = vmatmul.mubr.bf16.vlgmr.msra.gmra.mxu0 %v2019_v2 }
 0x10c   : > { %v863_v36 = vpop.f32.mrf.mxu1 }
 0x10d   : > { %v864_v38 = vadd.f32 %v863_v36, %v282_v33  ;;  %v822_v41 = vpop.f32.mrf.mxu0  ;;  %v278_v33 = vrot.slane %v2098_v29, %v277_v31 }
 0x10e   : > { %v2118_v40 = vpop.f32.mrf.mxu1  ;;  %v823_v43 = vadd.f32 %v822_v41, %v274_v35 }
 0x10f   : > { %v913_v42 = vpack.c.bf16 %v864_v38, %v864_v38  ;;  %v2120_v45 = vpop.f32.mrf.mxu0  ;;  %v866_v32 = vadd.f32 %v2118_v40, %v286_v30 }
 0x110   : > { %v867_v44 = vpop.f32.mrf.mxu1  ;;  %v911_v48 = vpack.c.bf16 %v823_v43, %v823_v43  ;;  %v825_v36 = vadd.f32 %v2120_v45, %v278_v33 }
 0x111   : > { %v922_v47 = vsel %vm917_vm1, %v913_v42, 0  ;;  %v826_v51 = vpop.f32.mrf.mxu0  ;;  %v914_v35 = vpack.c.bf16 %v866_v32, %v866_v32 }
 0x112   : > { %v868_v50 = vpop.f32.mrf.mxu1  ;;  %1558 = vmatpush3.bf16.xpose.msra.mxu1 %v922_v47  ;;  %1026 = vrot.lane.b32.xlu1 %v911_v48, %s1788_s4  ;;  %v912_v38 = vpack.c.bf16 %v825_v36, %v825_v36 }
 0x113   : > { %1563 = vmatprep.subr.bf16.mxu1 %v1786_v3  ;;  %v827_v52 = vpop.f32.mrf.mxu0  ;;  %v1143_v29 = vsel %vm917_vm1, %v914_v35, 0 }
 0x119   : > { %1560 = vmatmul.mubr.msk.bf16.vlgmr.msra.gmra.mxu1 %vm917_vm1, %v911_v48 }
 0x11a   : > { %1565 = vmatprep.mubr.msk.bf16.mxu1 %vm1787_vm0, %v1786_v3 }
 0x14d   : > { %v904_v62 = vpop.f32.mrf.mxu0 }
 0x14e   : > { %v905_v1 = vadd.f32 %v904_v62, %v290_v63 }
 0x14f   : > { %v906_v0 = vpop.f32.mrf.mxu0 }
 0x150   : > { %v915_v2 = vpack.c.bf16 %v905_v1, %v905_v1  ;;  %v907_v39 = vadd.f32 %v906_v0, %v294_v37 }
 0x151   : > { %v908_v4 = vpop.f32.mrf.mxu0 }
 0x152   : > { %v981_v6 = vsel %vm979_vm3, %v915_v2, 0  ;;  %v916_v41 = vpack.c.bf16 %v907_v39, %v907_v39 }
 0x153   : > { %v909_v5 = vpop.f32.mrf.mxu0  ;;  %1564 = vmatpush3.bf16.msra.mxu1 %v981_v6 }
 0x154   : > { %1569 = vmatprep.subr.bf16.mxu1 %v1786_v3  ;;  %v1200_v47 = vsel %vm979_vm3, %v916_v41, 0 }
 0x184   : > { %v1027_v17 = vpop.permute.xlu1 %1026 }
 0x1d9   : > { %v958_v56 = vpop.f32.mrf.mxu1 }
 0x1da   : > { %v965_v57 = vsel %vm964_vm2, %v958_v56, -inf }
 0x1db   : > { %966 = vmax.xlane.f32.xlu0 %v965_v57  ;;  %v1561_v58 = vpop.f32.mrf.mxu1 }
 0x1dd   : > { %v961_v59 = vpop.f32.mrf.mxu1 }
 0x1df   : > { %v1562_v60 = vpop.f32.mrf.mxu1 }
 0x1f1   : > { %1029 = vrot.lane.b32.xlu0 %v913_v42, %s1788_s4 }
 0x1f5   : > { %1089 = vrot.lane.b32.xlu0 %v915_v2, %s1788_s4 }
 0x264   : > { %v967_v7 = vpop.xlane.xlu0 %966 }
 0x265   : > { %v968_v8 = vsub.f32 %v958_v56, %v967_v7 }
 0x267   : > { %v969_v9 = vmul.f32 0.125, %v968_v8 }
 0x268   : > { %v1030_v12 = vpop.permute.xlu0 %1029 }
 0x269   : > { %v970_v10 = vmul.f32 1.442695, %v969_v9  ;;  %v1035_v14 = vsel %vm917_vm1, %v1030_v12, 0 }
 0x26b   : > { %1762 = vpow2.f32 %v970_v10 }
 0x26c   : > { %v1090_v15 = vpop.permute.xlu0 %1089 }
 0x26d   : > { %v1095_v16 = vsel %vm979_vm3, %v1090_v15, 0 }
 0x278   : > { %v2151_v11 = vpop.eup %1762 }
 0x279   : > { %v975_v13 = vpack.c.bf16 %v2151_v11, %v2151_v11 }
 0x27b   : > { %1566 = vmatmul.mubr.msk.bf16.vlgmr.msra.gmra.mxu1 %vm964_vm2, %v975_v13 }
 0x27c   : > { %1570 = vmatpush3.bf16.xpose.msra.mxu1 %v1035_v14  ;;  %1571 = vmatprep.mubr.msk.bf16.mxu1 %vm1787_vm0, %v1786_v3 }
 0x27d   : > { %1575 = vmatprep.subr.bf16.mxu1 %v1786_v3 }
 0x283   : > { %1572 = vmatmul.mubr.msk.bf16.vlgmr.msra.gmra.mxu1 %vm917_vm1, %v1027_v17 }
 0x284   : > { %1576 = vmatpush3.bf16.msra.mxu1 %v1095_v16  ;;  %1577 = vmatprep.mubr.msk.bf16.mxu1 %vm1787_vm0, %v1786_v3 }
 0x285   : > { %1581 = vmatprep.subr.bf16.mxu1 %v1786_v3 }
 0x33b   : > { %v2165_v18 = vpop.f32.mrf.mxu1 }
 0x33d   : > { %v1567_v19 = vpop.f32.mrf.mxu1 }
 0x33e   : > { %v972_v19 = vsel %vm964_vm2, %v2151_v11, 0.0 }
 0x33f   : > { %v1020_v20 = vpop.f32.mrf.mxu1 }
 0x341   : > { %v1568_v21 = vpop.f32.mrf.mxu1 }
 0x343   : > { %v1071_v22 = vpop.f32.mrf.mxu1 }
 0x344   : > { %v1077_v23 = vsel %vm964_vm2, %v1071_v22, -inf }
 0x345   : > { %1078 = vmax.xlane.f32.xlu1 %v1077_v23  ;;  %v1573_v24 = vpop.f32.mrf.mxu1 }
 0x347   : > { %v1074_v26 = vpop.f32.mrf.mxu1 }
 0x349   : > { %v1574_v28 = vpop.f32.mrf.mxu1 }
 0x356   : > { %1248 = vrot.lane.b32.xlu1 %v914_v35, %s1788_s4 }
 0x35a   : > { %1245 = vrot.lane.b32.xlu1 %v912_v38, %s1788_s4 }
 0x35e   : > { %1308 = vrot.lane.b32.xlu1 %v916_v41, %s1788_s4 }
 0x3ce   : > { %v1079_v42 = vpop.xlane.xlu1 %1078 }
 0x3cf   : > { %v1080_v40 = vsub.f32 %v1071_v22, %v1079_v42 }
 0x3d1   : > { %v1081_v43 = vmul.f32 0.125, %v1080_v40 }
 0x3d2   : > { %v1249_v48 = vpop.permute.xlu1 %1248 }
 0x3d3   : > { %v1082_v44 = vmul.f32 1.442695, %v1081_v43  ;;  %v1254_v7 = vsel %vm917_vm1, %v1249_v48, 0 }
 0x3d5   : > { %1764 = vpow2.f32 %v1082_v44 }
 0x3d6   : > { %v1246_v49 = vpop.permute.xlu1 %1245 }
 0x3da   : > { %v1309_v50 = vpop.permute.xlu1 %1308 }
 0x3db   : > { %v1314_v8 = vsel %vm979_vm3, %v1309_v50, 0 }
 0x3e2   : > { %v1765_v25 = vpop.eup %1764 }
 0x3e3   : > { %v1084_v46 = vsel %vm964_vm2, %v1765_v25, 0.0  ;;  %v1087_v45 = vpack.c.bf16 %v1765_v25, %v1765_v25 }
 0x3e4   : > { %1085 = vadd.xlane.f32.xlu1 %v1084_v46 }
 0x3e5   : > { %1578 = vmatmul.mubr.msk.bf16.vlgmr.msra.gmra.mxu1 %vm964_vm2, %v1087_v45 }
 0x3e6   : > { %1582 = vmatpush3.bf16.xpose.msra.mxu1 %v1143_v29  ;;  %1583 = vmatprep.mubr.msk.bf16.mxu1 %vm1787_vm0, %v1786_v3 }
 0x3e7   : > { %1587 = vmatprep.subr.bf16.mxu1 %v1786_v3 }
 0x3ed   : > { %1584 = vmatmul.mubr.msk.bf16.vlgmr.msra.gmra.mxu1 %vm917_vm1, %v912_v38 }
 0x3ee   : > { %1588 = vmatpush3.bf16.msra.mxu1 %v1200_v47  ;;  %1589 = vmatprep.mubr.msk.bf16.mxu1 %vm1787_vm0, %v1786_v3 }
 0x3ef   : > { %1593 = vmatprep.subr.bf16.mxu1 %v1786_v3 }
 0x46d   : > { %v1086_v51 = vpop.xlane.xlu1 %1085 }
 0x46e   : > { %1766 = vrcp.f32 %v1086_v51 }
 0x47b   : > { %v1767_v52 = vpop.eup %1766 }
 0x4a5   : > { %v1131_v53 = vpop.f32.mrf.mxu1 }
 0x4a6   : > { %v1138_v54 = vmul.f32 %v1767_v52, %v1131_v53 }
 0x4a7   : > { %v1579_v55 = vpop.f32.mrf.mxu1 }
 0x4a8   : > { %v1359_v56 = vpack.c.bf16 %v1138_v54, %v1138_v54 }
 0x4a9   : > { %v1134_v57 = vpop.f32.mrf.mxu1 }
 0x4aa   : > { %1364 = vst.msk [vmem:[%s2194_s16 + $0x4] sm:$0xf] %vm1362_vm4, %v1359_v56 }
 0x4ab   : > { %v1580_v58 = vpop.f32.mrf.mxu1 }
 0x4ad   : > { %v1179_v59 = vpop.f32.mrf.mxu1 }
 0x4ae   : > { %v1185_v60 = vsel %vm964_vm2, %v1179_v59, -inf }
 0x4af   : > { %1186 = vmax.xlane.f32.xlu0 %v1185_v60  ;;  %v1585_v61 = vpop.f32.mrf.mxu1 }
 0x4b1   : > { %v1182_v62 = vpop.f32.mrf.mxu1 }
 0x4b3   : > { %v1586_v63 = vpop.f32.mrf.mxu1 }
 0x538   : > { %v1187_v0 = vpop.xlane.xlu0 %1186 }
 0x539   : > { %v1188_v1 = vsub.f32 %v1179_v59, %v1187_v0 }
 0x53b   : > { %v1189_v4 = vmul.f32 0.125, %v1188_v1 }
 0x53d   : > { %v1190_v2 = vmul.f32 1.442695, %v1189_v4 }
 0x53f   : > { %1768 = vpow2.f32 %v1190_v2 }
 0x54c   : > { %v1769_v5 = vpop.eup %1768 }
 0x54d   : > { %v1195_v6 = vpack.c.bf16 %v1769_v5, %v1769_v5  ;;  %v1192_v21 = vsel %vm964_vm2, %v1769_v5, 0.0 }
 0x54f   : > { %1590 = vmatmul.mubr.msk.bf16.vlgmr.msra.gmra.mxu1 %vm964_vm2, %v1195_v6 }
 0x550   : > { %1594 = vmatpush3.bf16.xpose.msra.mxu1 %v1254_v7  ;;  %1595 = vmatprep.mubr.msk.bf16.mxu1 %vm1787_vm0, %v1786_v3 }
 0x551   : > { %1599 = vmatprep.subr.bf16.mxu1 %v1786_v3 }
 0x557   : > { %1596 = vmatmul.mubr.msk.bf16.vlgmr.msra.gmra.mxu1 %vm917_vm1, %v1246_v49 }
 0x558   : > { %1600 = vmatpush3.bf16.msra.mxu1 %v1314_v8  ;;  %1601 = vmatprep.mubr.msk.bf16.mxu1 %vm1787_vm0, %v1786_v3 }
 0x60f   : > { %v1236_v9 = vpop.f32.mrf.mxu1 }
 0x611   : > { %v1591_v10 = vpop.f32.mrf.mxu1 }
 0x613   : > { %v1239_v12 = vpop.f32.mrf.mxu1 }
 0x615   : > { %v1592_v13 = vpop.f32.mrf.mxu1 }
 0x617   : > { %v1290_v14 = vpop.f32.mrf.mxu1 }
 0x618   : > { %v1296_v15 = vsel %vm964_vm2, %v1290_v14, -inf }
 0x619   : > { %1297 = vmax.xlane.f32.xlu0 %v1296_v15  ;;  %v1597_v16 = vpop.f32.mrf.mxu1 }
 0x61b   : > { %v1293_v17 = vpop.f32.mrf.mxu1 }
 0x61d   : > { %973 = vadd.xlane.f32.xlu0 %v972_v19  ;;  %v1598_v20 = vpop.f32.mrf.mxu1 }
 0x621   : > { %1193 = vadd.xlane.f32.xlu0 %v1192_v21 }
 0x6a2   : > { %v1298_v22 = vpop.xlane.xlu0 %1297 }
 0x6a3   : > { %v1299_v3 = vsub.f32 %v1290_v14, %v1298_v22 }
 0x6a5   : > { %v1300_v23 = vmul.f32 0.125, %v1299_v3 }
 0x6a6   : > { %v974_v24 = vpop.xlane.xlu0 %973 }
 0x6a7   : > { %v1301_v26 = vmul.f32 1.442695, %v1300_v23  ;;  %1770 = vrcp.f32 %v974_v24 }
 0x6a9   : > { %1772 = vpow2.f32 %v1301_v26 }
 0x6aa   : > { %v1194_v27 = vpop.xlane.xlu0 %1193 }
 0x6ab   : > { %1774 = vrcp.f32 %v1194_v27 }
 0x6b4   : > { %v1771_v28 = vpop.eup %1770 }
 0x6b5   : > { %v1024_v30 = vmul.f32 %v1771_v28, %v2165_v18 }
 0x6b6   : > { %v1773_v11 = vpop.eup %1772 }
 0x6b7   : > { %v1358_v31 = vpack.c.bf16 %v1024_v30, %v1024_v30  ;;  %v1303_v32 = vsel %vm964_vm2, %v1773_v11, 0.0  ;;  %v1306_v33 = vpack.c.bf16 %v1773_v11, %v1773_v11 }
 0x6b8   : > { %v1775_v34 = vpop.eup %1774  ;;  %1304 = vadd.xlane.f32.xlu0 %v1303_v32 }
 0x6b9   : > { %1363 = vst.msk [vmem:[%s2194_s16] sm:$0xf] %vm1362_vm4, %v1358_v31  ;;  %v1243_v35 = vmul.f32 %v1775_v34, %v1236_v9  ;;  %1602 = vmatmul.mubr.msk.bf16.vlgmr.msra.gmra.mxu1 %vm964_vm2, %v1306_v33 }
 0x6bb   : > { %v1360_v36 = vpack.c.bf16 %v1243_v35, %v1243_v35 }
 0x6bd   : > { %1365 = vst.msk [vmem:[%s2194_s16 + $0x8] sm:$0xf] %vm1362_vm4, %v1360_v36 }
 0x741   : > { %v1305_v37 = vpop.xlane.xlu0 %1304 }
 0x742   : > { %1776 = vrcp.f32 %v1305_v37 }
 0x74f   : > { %v1777_v38 = vpop.eup %1776 }
 0x779   : > { %v1350_v18 = vpop.f32.mrf.mxu1 }
 0x77a   : > { %v1357_v39 = vmul.f32 %v1777_v38, %v1350_v18 }
 0x77b   : > { %v1603_v41 = vpop.f32.mrf.mxu1 }
 0x77c   : > { %v1361_v42 = vpack.c.bf16 %v1357_v39, %v1357_v39 }
 0x77d   : > { %v1353_v40 = vpop.f32.mrf.mxu1 }
 0x77e   : > { %1366 = vst.msk [vmem:[%s2194_s16 + $0xc] sm:$0xf] %vm1362_vm4, %v1361_v42 }
 0x77f   : > { %v1604_v43 = vpop.f32.mrf.mxu1 }
 0x780 PF: > { %s13_s12 = sadd.s32 1, %s1784_s12  }
 0x781   : > { %p10_p4 = scmp.ge.s32.totalorder %s13_s12, 4  }
 0x783   :  { %12 = sbr.rel (!%p10_p4) target bundleno = 1 (0x1), region = 62 }

</bundles_post_ra>
